<compile_context>
chip_gen: v7x
topology: tpu7x:2x2x1
jax: 0.10.0
libtpu: 0.0.40
codegen_flags: <defaults>
</compile_context>

<pallas_src>
import math

import jax
import jax.numpy as jnp
from jax.experimental import pallas as pl
from jax.experimental.pallas import tpu as pltpu

_LANE = 128


# --------------------------------------------------------------------------- #
# Parameter construction (mirrors the PyTorch module's shapes / init).
# Weights stored [in_features, out_features]; biases [1, out_features].
# --------------------------------------------------------------------------- #
def init_params(key, layers, n_classes=1, dtype=jnp.float32):
    n_hidden = len(layers) - 1
    params = {"state": [], "action": []}
    keys = jax.random.split(key, 4 * n_hidden + 4)
    k_idx = 0

    def linear(kw, kb, fan_in, fan_out):
        bound = 1.0 / math.sqrt(fan_in)
        w = jax.random.uniform(kw, (fan_in, fan_out), dtype, -bound, bound)
        b = jax.random.uniform(kb, (1, fan_out), dtype, -bound, bound)
        return w, b

    for head in ("state", "action"):
        for i in range(n_hidden):
            w, b = linear(keys[k_idx], keys[k_idx + 1], layers[i], layers[i + 1])
            k_idx += 2
            params[head].append((w, b))

    out_dims = {"state": 2 * n_classes + 1, "action": n_classes + 1}
    for head in ("state", "action"):
        w, b = linear(keys[k_idx], keys[k_idx + 1], layers[-1], out_dims[head])
        k_idx += 2
        params[head].append((w, b))
    return params


# --------------------------------------------------------------------------- #
# Fuse the two heads into one chain of lane-dense (W, b) pairs.
#
# layer 0   : [D_in, pad128(Hs0+Ha0)]     concat along out dim (shared input)
# layer i>0 : [pad_prev, pad128(Hsi+Hai)] block-diagonal (heads independent)
# final     : [pad_prev, pad128(So+Ao)]   block-diag into the output slab
#
# Padding columns get zero weight + zero bias; the next layer's extra K rows
# are zero, so the padding is numerically exact (ReLU(0)=0, 0 * w = 0).
# Weights are cast to `compute_dtype` (MXU operands); biases stay f32.
# --------------------------------------------------------------------------- #
def fuse_params(params, compute_dtype=jnp.bfloat16):
    state_p, action_p = params["state"], params["action"]
    n_layers = len(state_p)
    assert n_layers >= 2, "expected at least one hidden layer (len(layers) >= 2)"
    state_out = state_p[-1][0].shape[1]
    action_out = action_p[-1][0].shape[1]

    def pad_to(n, m):
        return ((n + m - 1) // m) * m

    fused = []
    prev_ns = prev_na = prev_pad = None
    for i in range(n_layers):
        ws, bs = state_p[i]
        wa, ba = action_p[i]
        ks, ns = ws.shape
        ka, na = wa.shape
        out_pad = pad_to(ns + na, _LANE)

        if i == 0:
            # Shared input: concatenate output columns.
            w = jnp.zeros((ks, out_pad), jnp.float32)
            w = w.at[:, :ns].set(ws).at[:, ns:ns + na].set(wa)
        else:
            # Block-diagonal over the previous layer's padded layout:
            # rows [0:prev_ns) = state activations, [prev_ns:prev_ns+prev_na)
            # = action activations, remaining rows are exact zeros.
            w = jnp.zeros((prev_pad, out_pad), jnp.float32)
            w = w.at[:ks, :ns].set(ws)
            w = w.at[prev_ns:prev_ns + ka, ns:ns + na].set(wa)

        b = jnp.zeros((1, out_pad), jnp.float32)
        b = b.at[:, :ns].set(bs).at[:, ns:ns + na].set(ba)

        fused.append((w.astype(compute_dtype), b.astype(jnp.float32)))
        prev_ns, prev_na, prev_pad = ns, na, out_pad

    return fused, state_out, action_out, prev_pad


# --------------------------------------------------------------------------- #
# Kernel: one fused matmul chain (ReLU between layers, linear at the end).
# --------------------------------------------------------------------------- #
def _make_fused_kernel(n_layers, compute_dtype):
    def kernel(x_ref, *refs):
        # refs = (w0, b0, w1, b1, ..., w_{L-1}, b_{L-1}, out_ref)
        out_ref = refs[-1]
        h = x_ref[...].astype(compute_dtype)
        for i in range(n_layers):
            w = refs[2 * i][...]
            b = refs[2 * i + 1][...]                    # f32 bias
            acc = jnp.dot(h, w, preferred_element_type=jnp.float32) + b
            if i < n_layers - 1:
                acc = jnp.maximum(acc, 0.0)             # ReLU on f32 accumulator
                h = acc.astype(compute_dtype)           # back to MXU operand dtype
            else:
                out_ref[...] = acc.astype(out_ref.dtype)

    return kernel


def _choose_batch_tile(batch):
    """Prefer multiples of 128 (full MXU rows) with >=2 grid steps; otherwise
    fall back to one grid step over the whole batch (no per-step overhead)."""
    for tb in (512, 256, 128):
        if batch % tb == 0 and batch // tb >= 2:
            return tb
    for tb in (512, 256, 128):
        if batch % tb == 0:
            return tb
    return batch


# --------------------------------------------------------------------------- #
# Wrapper.
# --------------------------------------------------------------------------- #
def classifier_heads_forward(inputs, params, *, batch_tile=None,
                             compute_dtype=jnp.bfloat16):
    """Fused two-head MLP. inputs: [B, layers[0]] ->
    {'state': [B, 2*n_classes+1], 'action': [B, n_classes+1]}."""
    B, d_in = inputs.shape
    # NOTE: in production, run fuse_params() once at init and reuse.
    fused, state_out, action_out, out_pad = fuse_params(params, compute_dtype)
    n_layers = len(fused)

    tb = batch_tile if batch_tile is not None else _choose_batch_tile(B)
    if B % tb != 0:
        tb = B
    grid = (B // tb,)

    flat_params = []
    for (w, b) in fused:
        flat_params.extend([w, b])

    x_spec = pl.BlockSpec((tb, d_in), lambda i: (i, 0))
    out_spec = pl.BlockSpec((tb, out_pad), lambda i: (i, 0))
    out_shape = jax.ShapeDtypeStruct((B, out_pad), inputs.dtype)
    # Grid-invariant full-array blocks for every weight/bias: Pallas does not
    # re-DMA a block whose index is unchanged between grid steps.
    param_specs = [pl.BlockSpec(p.shape, lambda i: (0, 0)) for p in flat_params]

    flops = 2 * B * sum(w.shape[0] * w.shape[1] for (w, _) in fused)
    bytes_accessed = (inputs.size * inputs.dtype.itemsize
                      + sum(p.size * p.dtype.itemsize for p in flat_params)
                      + B * out_pad * inputs.dtype.itemsize)
    cost = pl.CostEstimate(flops=flops, transcendentals=0,
                           bytes_accessed=bytes_accessed)

    out_padded = pl.pallas_call(
        _make_fused_kernel(n_layers, compute_dtype),
        out_shape=out_shape,
        grid_spec=pltpu.PrefetchScalarGridSpec(
            num_scalar_prefetch=0,
            grid=grid,
            in_specs=[x_spec] + param_specs,
            out_specs=out_spec,
        ),
        compiler_params=pltpu.CompilerParams(
            dimension_semantics=("parallel",)),
        cost_estimate=cost,
    )(inputs, *flat_params)

    return {"state": out_padded[:, :state_out],
            "action": out_padded[:, state_out:state_out + action_out]}


# --------------------------------------------------------------------------- #
# Pure-JAX reference (matches the PyTorch forward; compute_dtype controls the
# matmul operand precision so the kernel's bf16 path can be checked tightly).
# --------------------------------------------------------------------------- #
def classifier_heads_reference(inputs, params, compute_dtype=jnp.float32):
    def run_head(head_params):
        h = inputs.astype(jnp.float32)
        for (w, b) in head_params[:-1]:
            acc = jnp.dot(h.astype(compute_dtype), w.astype(compute_dtype),
                          preferred_element_type=jnp.float32) + b.astype(jnp.float32)
            h = jnp.maximum(acc, 0.0)
        wf, bf = head_params[-1]
        return jnp.dot(h.astype(compute_dtype), wf.astype(compute_dtype),
                       preferred_element_type=jnp.float32) + bf.astype(jnp.float32)

    return {"state": run_head(params["state"]),
            "action": run_head(params["action"])}


if __name__ == "__main__":
    # Small shapes consistent with the module: layers=[32, 64, 32], n_classes=1.
    layers = [32, 64, 32]
    n_classes = 1
    batch = 128  # one full 128-row MXU tile

    key = jax.random.PRNGKey(0)
    k_params, k_x = jax.random.split(key)
    params = init_params(k_params, layers, n_classes=n_classes)
    x = jax.random.normal(k_x, (batch, layers[0]), dtype=jnp.float32)

    out = classifier_heads_forward(x, params)
    out = jax.block_until_ready(out)

    assert out["state"].shape == (batch, 2 * n_classes + 1)
    assert out["action"].shape == (batch, n_classes + 1)

    # Tight check vs a reference using the same bf16-operand / f32-accumulate path.
    ref_bf16 = classifier_heads_reference(x, params, compute_dtype=jnp.bfloat16)
    # Loose sanity check vs the full-f32 PyTorch-equivalent reference.
    ref_f32 = classifier_heads_reference(x, params, compute_dtype=jnp.float32)
    for k in ("state", "action"):
        assert jnp.allclose(out[k], ref_bf16[k], atol=1e-3, rtol=1e-3), k
        assert jnp.allclose(out[k], ref_f32[k], atol=5e-2, rtol=5e-2), k

    print("KERNEL_OK")
</pallas_src>

<mosaic_0001>
module attributes {stable_mosaic.version = 11 : i64} {
  func.func @kernel(%arg0: i32, %arg1: memref<128x32xf32, #tpu.memory_space<vmem>>, %arg2: memref<32x128xbf16, #tpu.memory_space<vmem>>, %arg3: memref<1x128xf32, #tpu.memory_space<vmem>>, %arg4: memref<128x128xbf16, #tpu.memory_space<vmem>>, %arg5: memref<1x128xf32, #tpu.memory_space<vmem>>, %arg6: memref<128x128xbf16, #tpu.memory_space<vmem>>, %arg7: memref<1x128xf32, #tpu.memory_space<vmem>>, %arg8: memref<128x128xf32, #tpu.memory_space<vmem>>) attributes {dimension_semantics = [#tpu.dimension_semantics<parallel>], iteration_bounds = array<i64: 1>, scalar_prefetch = 0 : i64, scratch_operands = 0 : i64, tpu.core_type = #tpu.core_type<tc>, window_params = [{transform_indices = @transform_0, window_bounds = array<i64: 128, 32>}, {pipeline_mode = #tpu.pipeline_mode<synchronous>, transform_indices = @transform_1, window_bounds = array<i64: 32, 128>}, {pipeline_mode = #tpu.pipeline_mode<synchronous>, transform_indices = @transform_2, window_bounds = array<i64: 1, 128>}, {pipeline_mode = #tpu.pipeline_mode<synchronous>, transform_indices = @transform_3, window_bounds = array<i64: 128, 128>}, {pipeline_mode = #tpu.pipeline_mode<synchronous>, transform_indices = @transform_4, window_bounds = array<i64: 1, 128>}, {pipeline_mode = #tpu.pipeline_mode<synchronous>, transform_indices = @transform_5, window_bounds = array<i64: 128, 128>}, {pipeline_mode = #tpu.pipeline_mode<synchronous>, transform_indices = @transform_6, window_bounds = array<i64: 1, 128>}, {transform_indices = @transform_7, window_bounds = array<i64: 128, 128>}]} {
    %c0 = arith.constant 0 : index
    %c0_0 = arith.constant 0 : index
    %0 = vector.load %arg1[%c0, %c0_0] : memref<128x32xf32, #tpu.memory_space<vmem>>, vector<128x32xf32>
    %1 = arith.truncf %0 : vector<128x32xf32> to vector<128x32xbf16>
    %c0_1 = arith.constant 0 : index
    %c0_2 = arith.constant 0 : index
    %2 = vector.load %arg2[%c0_1, %c0_2] : memref<32x128xbf16, #tpu.memory_space<vmem>>, vector<32x128xbf16>
    %c0_3 = arith.constant 0 : index
    %c0_4 = arith.constant 0 : index
    %3 = vector.load %arg3[%c0_3, %c0_4] : memref<1x128xf32, #tpu.memory_space<vmem>>, vector<1x128xf32>
    %cst = arith.constant dense<0.000000e+00> : vector<128x128xf32>
    %4 = tpu.matmul %1, %2, %cst {dimension_numbers = #tpu.dot_dimension_numbers<[1], [0], [0], [1], [0, 0, 1, 1], [], []>} : vector<128x32xbf16>, vector<32x128xbf16>, vector<128x128xf32> -> vector<128x128xf32>
    %5 = vector.broadcast %3 : vector<1x128xf32> to vector<128x128xf32>
    %6 = arith.addf %4, %5 : vector<128x128xf32>
    %cst_5 = arith.constant 0.000000e+00 : f32
    %7 = vector.broadcast %cst_5 : f32 to vector<128x128xf32>
    %8 = arith.maximumf %6, %7 : vector<128x128xf32>
    %9 = arith.truncf %8 : vector<128x128xf32> to vector<128x128xbf16>
    %c0_6 = arith.constant 0 : index
    %c0_7 = arith.constant 0 : index
    %10 = vector.load %arg4[%c0_6, %c0_7] : memref<128x128xbf16, #tpu.memory_space<vmem>>, vector<128x128xbf16>
    %c0_8 = arith.constant 0 : index
    %c0_9 = arith.constant 0 : index
    %11 = vector.load %arg5[%c0_8, %c0_9] : memref<1x128xf32, #tpu.memory_space<vmem>>, vector<1x128xf32>
    %cst_10 = arith.constant dense<0.000000e+00> : vector<128x128xf32>
    %12 = tpu.matmul %9, %10, %cst_10 {dimension_numbers = #tpu.dot_dimension_numbers<[1], [0], [0], [1], [0, 0, 1, 1], [], []>} : vector<128x128xbf16>, vector<128x128xbf16>, vector<128x128xf32> -> vector<128x128xf32>
    %13 = vector.broadcast %11 : vector<1x128xf32> to vector<128x128xf32>
    %14 = arith.addf %12, %13 : vector<128x128xf32>
    %cst_11 = arith.constant 0.000000e+00 : f32
    %15 = vector.broadcast %cst_11 : f32 to vector<128x128xf32>
    %16 = arith.maximumf %14, %15 : vector<128x128xf32>
    %17 = arith.truncf %16 : vector<128x128xf32> to vector<128x128xbf16>
    %c0_12 = arith.constant 0 : index
    %c0_13 = arith.constant 0 : index
    %18 = vector.load %arg6[%c0_12, %c0_13] : memref<128x128xbf16, #tpu.memory_space<vmem>>, vector<128x128xbf16>
    %c0_14 = arith.constant 0 : index
    %c0_15 = arith.constant 0 : index
    %19 = vector.load %arg7[%c0_14, %c0_15] : memref<1x128xf32, #tpu.memory_space<vmem>>, vector<1x128xf32>
    %cst_16 = arith.constant dense<0.000000e+00> : vector<128x128xf32>
    %20 = tpu.matmul %17, %18, %cst_16 {dimension_numbers = #tpu.dot_dimension_numbers<[1], [0], [0], [1], [0, 0, 1, 1], [], []>} : vector<128x128xbf16>, vector<128x128xbf16>, vector<128x128xf32> -> vector<128x128xf32>
    %21 = vector.broadcast %19 : vector<1x128xf32> to vector<128x128xf32>
    %22 = arith.addf %20, %21 : vector<128x128xf32>
    %c0_17 = arith.constant 0 : index
    %c0_18 = arith.constant 0 : index
    %23 = vector.load %arg8[%c0_17, %c0_18] : memref<128x128xf32, #tpu.memory_space<vmem>>, vector<128x128xf32>
    tpu.vector_store %arg8[%c0_17, %c0_18], %22 {strides = array<i32>} : memref<128x128xf32, #tpu.memory_space<vmem>>, vector<128x128xf32>,
    return
  }
  func.func @transform_0(%arg0: i32) -> (i32, i32) {
    %c0_i32 = arith.constant 0 : i32
    %c0_i32_0 = arith.constant 0 : i32
    return %arg0, %c0_i32 : i32, i32
  }
  func.func @transform_1(%arg0: i32) -> (i32, i32) {
    %c0_i32 = arith.constant 0 : i32
    %c0_i32_0 = arith.constant 0 : i32
    %c0_i32_1 = arith.constant 0 : i32
    return %c0_i32, %c0_i32_0 : i32, i32
  }
  func.func @transform_2(%arg0: i32) -> (i32, i32) {
    %c0_i32 = arith.constant 0 : i32
    %c0_i32_0 = arith.constant 0 : i32
    %c0_i32_1 = arith.constant 0 : i32
    return %c0_i32, %c0_i32_0 : i32, i32
  }
  func.func @transform_3(%arg0: i32) -> (i32, i32) {
    %c0_i32 = arith.constant 0 : i32
    %c0_i32_0 = arith.constant 0 : i32
    %c0_i32_1 = arith.constant 0 : i32
    return %c0_i32, %c0_i32_0 : i32, i32
  }
  func.func @transform_4(%arg0: i32) -> (i32, i32) {
    %c0_i32 = arith.constant 0 : i32
    %c0_i32_0 = arith.constant 0 : i32
    %c0_i32_1 = arith.constant 0 : i32
    return %c0_i32, %c0_i32_0 : i32, i32
  }
  func.func @transform_5(%arg0: i32) -> (i32, i32) {
    %c0_i32 = arith.constant 0 : i32
    %c0_i32_0 = arith.constant 0 : i32
    %c0_i32_1 = arith.constant 0 : i32
    return %c0_i32, %c0_i32_0 : i32, i32
  }
  func.func @transform_6(%arg0: i32) -> (i32, i32) {
    %c0_i32 = arith.constant 0 : i32
    %c0_i32_0 = arith.constant 0 : i32
    %c0_i32_1 = arith.constant 0 : i32
    return %c0_i32, %c0_i32_0 : i32, i32
  }
  func.func @transform_7(%arg0: i32) -> (i32, i32) {
    %c0_i32 = arith.constant 0 : i32
    %c0_i32_0 = arith.constant 0 : i32
    return %arg0, %c0_i32 : i32, i32
  }
}

</mosaic_0001>

<bundles_post_ra>
// kernel: tpu_custom_call.1
= control target key start
LH: loop header
LB: loop body
LE: loop exit
PB: predicated region body
PF: predicated region fallthrough
CT: control target
= control target key end

     0   :  { %vm75_vm0 = vcmask 261120   ;;  %s987_s0 = inlined_call_operand.vmem [shape: f32[128,32], index: 0, kind: input, shape index: {}]   ;;  %s988_s1 = inlined_call_operand.vmem [shape: bf16[32,128], index: 1, kind: input, shape index: {}]   ;;  %s989_s2 = inlined_call_operand.vmem [shape: f32[1,128], index: 2, kind: input, shape index: {}]   ;;  %s990_s3 = inlined_call_operand.vmem [shape: bf16[128,128], index: 3, kind: input, shape index: {}]   ;;  %s991_s4 = inlined_call_operand.vmem [shape: f32[1,128], index: 4, kind: input, shape index: {}]   ;;  %s992_s5 = inlined_call_operand.vmem [shape: bf16[128,128], index: 5, kind: input, shape index: {}]   ;;  %s993_s6 = inlined_call_operand.vmem [shape: f32[1,128], index: 6, kind: input, shape index: {}]   ;;  %s994_s7 = inlined_call_operand.hbm [shape: f32[128,128], index: 7, kind: output, shape index: {}]  }
   0x1   :  { %v771_v0 = vld [vmem:[%s988_s1] sm:$0xff]   ;;  %v772_v1 = vld [vmem:[%s988_s1 + $0x8] sm:$0xff]   ;;  %v30_v5 = vld [vmem:[%s987_s0 + $0x10] sm:$0xff] }
   0x2   :  { %684 = vmatprep.subr.bf16.mxu0 %v771_v0  ;;  %v28_v2 = vld [vmem:[%s987_s0] sm:$0xff]  ;;  %v29_v3 = vld [vmem:[%s987_s0 + $0x8] sm:$0xff]  ;;  %v31_v6 = vld [vmem:[%s987_s0 + $0x18] sm:$0xff] }
   0x3   :  { %685 = vmatpush3.bf16.msra.mxu0 %v771_v0  ;;  %v44_v4 = vpack.c.bf16 %v29_v3, %v28_v2  ;;  %v32_v7 = vld [vmem:[%s987_s0 + $0x20] sm:$0xff]  ;;  %v33_v8 = vld [vmem:[%s987_s0 + $0x28] sm:$0xff]  ;;  %v45_v9 = vpack.c.bf16 %v31_v6, %v30_v5  ;;  %v34_v12 = vld [vmem:[%s987_s0 + $0x30] sm:$0xff] }
   0x4   :  { %686 = vmatprep.subr.bf16.mxu0 %v772_v1  ;;  %v46_v10 = vpack.c.bf16 %v33_v8, %v32_v7  ;;  %v773_v11 = vld [vmem:[%s990_s3] sm:$0xff]   ;;  %v35_v13 = vld [vmem:[%s987_s0 + $0x38] sm:$0xff]  ;;  %v774_v14 = vld [vmem:[%s990_s3 + $0x8] sm:$0xff]  }
   0x5   :  { %688 = vmatprep.mubr.msk.bf16.mxu0 %vm75_vm0, %v44_v4  ;;  %v36_v15 = vld [vmem:[%s987_s0 + $0x40] sm:$0xff]  ;;  %704 = vmatprep.subr.bf16.mxu1 %v773_v11  ;;  %v37_v16 = vld [vmem:[%s987_s0 + $0x48] sm:$0xff]  ;;  %v775_v17 = vld [vmem:[%s990_s3 + $0x10] sm:$0xff]   ;;  %v47_v18 = vpack.c.bf16 %v35_v13, %v34_v12 }
   0x6   :  { %705 = vmatpush3.bf16.msra.mxu1 %v773_v11  ;;  %v776_v19 = vld [vmem:[%s990_s3 + $0x18] sm:$0xff]   ;;  %v48_v20 = vpack.c.bf16 %v37_v16, %v36_v15  ;;  %v38_v21 = vld [vmem:[%s987_s0 + $0x50] sm:$0xff]  ;;  %v40_v23 = vld [vmem:[%s987_s0 + $0x60] sm:$0xff] }
   0x7   :  { %687 = vmatpush3.bf16.msra.mxu0 %v772_v1  ;;  %706 = vmatprep.subr.bf16.mxu1 %v774_v14  ;;  %v39_v22 = vld [vmem:[%s987_s0 + $0x58] sm:$0xff]  ;;  %v41_v24 = vld [vmem:[%s987_s0 + $0x68] sm:$0xff]  ;;  %v777_v25 = vld [vmem:[%s990_s3 + $0x20] sm:$0xff]  }
   0xa   :  { %689 = vmatmul.mubr.msk.bf16.vlgmr.msra.gmra.mrb[0].mxu0 %vm75_vm0, %v45_v9  ;;  %707 = vmatpush3.bf16.msra.mxu1 %v774_v14 }
   0xb   :  { %692 = vmatprep.mubr.msk.bf16.mxu0 %vm75_vm0, %v46_v10  ;;  %708 = vmatprep.subr.bf16.mxu1 %v775_v17 }
   0xe   :  { %709 = vmatpush3.bf16.msra.mxu1 %v775_v17 }
   0xf   :  { %710 = vmatprep.subr.bf16.mxu1 %v776_v19 }
  0x12   :  { %693 = vmatmul.mubr.msk.bf16.gmra.mrb[4].mxu0 %vm75_vm0, %v47_v18 }
  0x13   :  { %696 = vmatprep.mubr.msk.bf16.mxu0 %vm75_vm0, %v48_v20 }
  0x14   :  { %12 = vsyncpa [#allocation3], 0  ;;  %v49_v26 = vpack.c.bf16 %v39_v22, %v38_v21  ;;  %v50_v27 = vpack.c.bf16 %v41_v24, %v40_v23  ;;  %711 = vmatpush3.bf16.msra.mxu1 %v776_v19  ;;  %v778_v28 = vld [vmem:[%s990_s3 + $0x28] sm:$0xff]   ;;  %v42_v29 = vld [vmem:[%s987_s0 + $0x70] sm:$0xff] }
  0x15   :  { %712 = vmatprep.subr.bf16.mxu1 %v777_v25  ;;  %v43_v30 = vld [vmem:[%s987_s0 + $0x78] sm:$0xff]  ;;  %v779_v32 = vld [vmem:[%s990_s3 + $0x30] sm:$0xff]   ;;  %v781_v34 = vld [vmem:[%s992_s5] sm:$0xff]  }
  0x16   :  { %v51_v31 = vpack.c.bf16 %v43_v30, %v42_v29  ;;  %v780_v33 = vld [vmem:[%s990_s3 + $0x38] sm:$0xff]   ;;  %v782_v35 = vld [vmem:[%s992_s5 + $0x8] sm:$0xff]   ;;  %736 = vmatprep.subr.bf16.mxu0 %v781_v34  ;;  %v783_v36 = vld [vmem:[%s992_s5 + $0x10] sm:$0xff]  }
  0x17   :  { %737 = vmatpush3.bf16.msra.mxu0 %v781_v34  ;;  %v784_v37 = vld [vmem:[%s992_s5 + $0x18] sm:$0xff]   ;;  %v785_v38 = vld [vmem:[%s992_s5 + $0x20] sm:$0xff]   ;;  %v786_v39 = vld [vmem:[%s992_s5 + $0x28] sm:$0xff]  }
  0x18   :  { %713 = vmatpush3.bf16.msra.mxu1 %v777_v25  ;;  %738 = vmatprep.subr.bf16.mxu0 %v782_v35  ;;  %v613_v40 = vld [vmem:[%s989_s2] ss:$0 sm:$0xff]  ;;  %v788_v34 = vld [vmem:[%s992_s5 + $0x38] sm:$0xff]  }
  0x19   :  { %714 = vmatprep.subr.bf16.mxu1 %v778_v28 }
  0x1a   :  { %697 = vmatmul.mubr.msk.bf16.gmra.mrb[8].mxu0 %vm75_vm0, %v49_v26 }
  0x1b   :  { %700 = vmatprep.mubr.msk.bf16.mxu0 %vm75_vm0, %v50_v27  ;;  %739 = vmatpush3.bf16.msra.mxu0 %v782_v35  ;;  %v624_v35 = vld [vmem:[%s991_s4] ss:$0 sm:$0xff] }
  0x1c   :  { %715 = vmatpush3.bf16.msra.mxu1 %v778_v28  ;;  %740 = vmatprep.subr.bf16.mxu0 %v783_v36 }
  0x1d   :  { %716 = vmatprep.subr.bf16.mxu1 %v779_v32 }
  0x1f   :  { %741 = vmatpush3.bf16.msra.mxu0 %v783_v36 }
  0x20   :  { %717 = vmatpush3.bf16.msra.mxu1 %v779_v32  ;;  %742 = vmatprep.subr.bf16.mxu0 %v784_v37 }
  0x21   :  { %718 = vmatprep.subr.bf16.mxu1 %v780_v33 }
  0x22   :  { %701 = vmatmul.mubr.msk.bf16.gmra.mrb[12].mxu0 %vm75_vm0, %v51_v31 }
  0x23   :  { %743 = vmatpush3.bf16.msra.mxu0 %v784_v37 }
  0x24   :  { %719 = vmatpush3.bf16.msra.mxu1 %v780_v33  ;;  %744 = vmatprep.subr.bf16.mxu0 %v785_v38  ;;  %v787_v33 = vld [vmem:[%s992_s5 + $0x30] sm:$0xff]  }
  0x27   :  { %745 = vmatpush3.bf16.msra.mxu0 %v785_v38 }
  0x28   :  { %746 = vmatprep.subr.bf16.mxu0 %v786_v39 }
  0x2b   :  { %747 = vmatpush3.bf16.msra.mxu0 %v786_v39 }
  0x2c   :  { %748 = vmatprep.subr.bf16.mxu0 %v787_v33 }
  0x2f   :  { %749 = vmatpush3.bf16.msra.mxu0 %v787_v33 }
  0x30   :  { %750 = vmatprep.subr.bf16.mxu0 %v788_v34 }
  0x33   :  { %751 = vmatpush3.bf16.msra.mxu0 %v788_v34 }
  0xdd   :  { %v690_v41 = vpop.f32.mrb[0].mxu0 }
  0xde   :  { %v143_v42 = vadd.f32 %v690_v41, %v613_v40  ;;  %v134_v43 = vpop.f32.mrb[1].mxu0 }
  0xdf   :  { %v135_v44 = vadd.f32 %v613_v40, %v134_v43  ;;  %v691_v45 = vpop.f32.mrb[2].mxu0 }
  0xe0   :  { %v146_v46 = vadd.f32 %v691_v45, %v613_v40  ;;  %v137_v47 = vpop.f32.mrb[3].mxu0  ;;  %v199_v49 = vmax.f32 %v143_v42, 0.0 }
  0xe1   :  { %v138_v48 = vadd.f32 %v613_v40, %v137_v47  ;;  %v197_v51 = vmax.f32 %v135_v44, 0.0 }
  0xe2   :  { %v200_v50 = vmax.f32 %v146_v46, 0.0 }
  0xe3   :  { %v198_v52 = vmax.f32 %v138_v48, 0.0 }
  0xe4   :  { %v214_v53 = vpack.c.bf16 %v200_v50, %v199_v49 }
  0xe5   :  { %v694_v54 = vpop.f32.mrb[4].mxu0  ;;  %v213_v55 = vpack.c.bf16 %v198_v52, %v197_v51 }
  0xe6   :  { %v159_v56 = vadd.f32 %v694_v54, %v613_v40  ;;  %v150_v57 = vpop.f32.mrb[5].mxu0 }
  0xe7   :  { %v151_v58 = vadd.f32 %v613_v40, %v150_v57  ;;  %v695_v59 = vpop.f32.mrb[6].mxu0  ;;  %720 = vmatprep.mubr.bf16.mxu1 %v213_v55 }
  0xe8   :  { %v162_v60 = vadd.f32 %v695_v59, %v613_v40  ;;  %v153_v61 = vpop.f32.mrb[7].mxu0  ;;  %721 = vmatmul.mubr.bf16.vlgmr.msra.gmra.mrb[0].mxu1 %v214_v53  ;;  %v203_v63 = vmax.f32 %v159_v56, 0.0 }
  0xe9   :  { %v154_v62 = vadd.f32 %v613_v40, %v153_v61  ;;  %v201_v1 = vmax.f32 %v151_v58, 0.0 }
  0xea   :  { %v204_v0 = vmax.f32 %v162_v60, 0.0 }
  0xeb   :  { %v202_v2 = vmax.f32 %v154_v62, 0.0 }
  0xec   :  { %v216_v3 = vpack.c.bf16 %v204_v0, %v203_v63 }
  0xed   :  { %v215_v4 = vpack.c.bf16 %v202_v2, %v201_v1  ;;  %v698_v5 = vpop.f32.mrb[8].mxu0 }
  0xee   :  { %v175_v6 = vadd.f32 %v698_v5, %v613_v40  ;;  %v166_v7 = vpop.f32.mrb[9].mxu0 }
  0xef   :  { %v167_v8 = vadd.f32 %v613_v40, %v166_v7  ;;  %v699_v9 = vpop.f32.mrb[10].mxu0  ;;  %724 = vmatprep.mubr.bf16.mxu1 %v215_v4 }
  0xf0   :  { %v178_v10 = vadd.f32 %v699_v9, %v613_v40  ;;  %v169_v11 = vpop.f32.mrb[11].mxu0  ;;  %725 = vmatmul.mubr.bf16.gmra.mrb[4].mxu1 %v216_v3  ;;  %v207_v13 = vmax.f32 %v175_v6, 0.0 }
  0xf1   :  { %v170_v12 = vadd.f32 %v613_v40, %v169_v11  ;;  %v205_v15 = vmax.f32 %v167_v8, 0.0 }
  0xf2   :  { %v208_v14 = vmax.f32 %v178_v10, 0.0 }
  0xf3   :  { %v206_v16 = vmax.f32 %v170_v12, 0.0 }
  0xf4   :  { %v218_v17 = vpack.c.bf16 %v208_v14, %v207_v13 }
  0xf5   :  { %v217_v18 = vpack.c.bf16 %v206_v16, %v205_v15  ;;  %v702_v19 = vpop.f32.mrb[12].mxu0 }
  0xf6   :  { %v191_v20 = vadd.f32 %v702_v19, %v613_v40  ;;  %v182_v21 = vpop.f32.mrb[13].mxu0 }
  0xf7   :  { %v183_v22 = vadd.f32 %v613_v40, %v182_v21  ;;  %v703_v23 = vpop.f32.mrb[14].mxu0  ;;  %728 = vmatprep.mubr.bf16.mxu1 %v217_v18 }
  0xf8   :  { %v194_v24 = vadd.f32 %v703_v23, %v613_v40  ;;  %v185_v25 = vpop.f32.mrb[15].mxu0  ;;  %729 = vmatmul.mubr.bf16.gmra.mrb[8].mxu1 %v218_v17  ;;  %v211_v27 = vmax.f32 %v191_v20, 0.0 }
  0xf9   :  { %v186_v26 = vadd.f32 %v613_v40, %v185_v25  ;;  %v209_v29 = vmax.f32 %v183_v22, 0.0 }
  0xfa   :  { %v212_v28 = vmax.f32 %v194_v24, 0.0 }
  0xfb   :  { %v210_v30 = vmax.f32 %v186_v26, 0.0 }
  0xfc   :  { %v220_v31 = vpack.c.bf16 %v212_v28, %v211_v27  ;;  %v633_v28 = vld [vmem:[%s993_s6] ss:$0 sm:$0xff]  ;;  %s813_s6 = smov [#allocation2]  }
  0xfd   :  { %v219_v32 = vpack.c.bf16 %v210_v30, %v209_v29  ;;  %s602_s21 = sshll.u32 %s813_s6, 4  ;;  %s603_s21 = int_to_ptr.vmem [resolvable:$true] %s602_s21 }
  0xfe   :  { %s789_s22 = scalar_lea.vmem %s603_s21, 2048  ;;  %p794_p1 = scmp.lt.s32.totalorder %s603_s21, %s603_s21 }
  0xff   :  { %732 = vmatprep.mubr.bf16.mxu1 %v219_v32  ;;  %p790_p0 = scmp.ne.s32.totalorder %s603_s21, %s789_s22  ;;  %p795_p2 = scmp.lt.s32.totalorder %s789_s22, %s789_s22 }
 0x100   :  { %733 = vmatmul.mubr.bf16.gmra.mrb[12].mxu1 %v220_v31 }
 0x101   :  { %p796_p3 = por %p795_p2, %p794_p1 }
 0x103   :  { %p797_p4 = pnand %p796_p3, %p790_p0 }
 0x1bb   :  { %v722_v36 = vpop.f32.mrb[0].mxu1 }
 0x1bc   :  { %v335_v37 = vadd.f32 %v722_v36, %v624_v35  ;;  %v326_v38 = vpop.f32.mrb[1].mxu1 }
 0x1bd   :  { %v327_v39 = vadd.f32 %v624_v35, %v326_v38  ;;  %v723_v40 = vpop.f32.mrb[2].mxu1 }
 0x1be   :  { %v338_v41 = vadd.f32 %v723_v40, %v624_v35  ;;  %v329_v42 = vpop.f32.mrb[3].mxu1  ;;  %v391_v44 = vmax.f32 %v335_v37, 0.0 }
 0x1bf   :  { %v330_v43 = vadd.f32 %v624_v35, %v329_v42  ;;  %v389_v46 = vmax.f32 %v327_v39, 0.0 }
 0x1c0   :  { %v392_v45 = vmax.f32 %v338_v41, 0.0 }
 0x1c1   :  { %v390_v47 = vmax.f32 %v330_v43, 0.0 }
 0x1c2   :  { %v406_v48 = vpack.c.bf16 %v392_v45, %v391_v44 }
 0x1c3   :  { %v405_v49 = vpack.c.bf16 %v390_v47, %v389_v46  ;;  %v726_v50 = vpop.f32.mrb[4].mxu1 }
 0x1c4   :  { %v351_v51 = vadd.f32 %v726_v50, %v624_v35  ;;  %v342_v52 = vpop.f32.mrb[5].mxu1 }
 0x1c5   :  { %v343_v53 = vadd.f32 %v624_v35, %v342_v52  ;;  %v727_v54 = vpop.f32.mrb[6].mxu1  ;;  %752 = vmatprep.mubr.bf16.mxu0 %v405_v49 }
 0x1c6   :  { %v354_v55 = vadd.f32 %v727_v54, %v624_v35  ;;  %v345_v56 = vpop.f32.mrb[7].mxu1  ;;  %753 = vmatmul.mubr.bf16.vlgmr.msra.gmra.mrb[16].mxu0 %v406_v48  ;;  %v395_v58 = vmax.f32 %v351_v51, 0.0 }
 0x1c7   :  { %v346_v57 = vadd.f32 %v624_v35, %v345_v56  ;;  %v393_v60 = vmax.f32 %v343_v53, 0.0 }
 0x1c8   :  { %v396_v59 = vmax.f32 %v354_v55, 0.0 }
 0x1c9   :  { %v394_v61 = vmax.f32 %v346_v57, 0.0 }
 0x1ca   :  { %v408_v62 = vpack.c.bf16 %v396_v59, %v395_v58 }
 0x1cb   :  { %v407_v63 = vpack.c.bf16 %v394_v61, %v393_v60  ;;  %v730_v0 = vpop.f32.mrb[8].mxu1 }
 0x1cc   :  { %v367_v1 = vadd.f32 %v730_v0, %v624_v35  ;;  %v358_v2 = vpop.f32.mrb[9].mxu1 }
 0x1cd   :  { %v359_v3 = vadd.f32 %v624_v35, %v358_v2  ;;  %v731_v4 = vpop.f32.mrb[10].mxu1  ;;  %756 = vmatprep.mubr.bf16.mxu0 %v407_v63 }
 0x1ce   :  { %v370_v5 = vadd.f32 %v731_v4, %v624_v35  ;;  %v361_v6 = vpop.f32.mrb[11].mxu1  ;;  %757 = vmatmul.mubr.bf16.gmra.mrb[20].mxu0 %v408_v62  ;;  %v399_v8 = vmax.f32 %v367_v1, 0.0 }
 0x1cf   :  { %v362_v7 = vadd.f32 %v624_v35, %v361_v6  ;;  %v397_v10 = vmax.f32 %v359_v3, 0.0 }
 0x1d0   :  { %v400_v9 = vmax.f32 %v370_v5, 0.0 }
 0x1d1   :  { %v398_v11 = vmax.f32 %v362_v7, 0.0 }
 0x1d2   :  { %v410_v12 = vpack.c.bf16 %v400_v9, %v399_v8 }
 0x1d3   :  { %v409_v13 = vpack.c.bf16 %v398_v11, %v397_v10  ;;  %v734_v14 = vpop.f32.mrb[12].mxu1 }
 0x1d4   :  { %v383_v15 = vadd.f32 %v734_v14, %v624_v35  ;;  %v374_v16 = vpop.f32.mrb[13].mxu1 }
 0x1d5   :  { %v375_v17 = vadd.f32 %v624_v35, %v374_v16  ;;  %v735_v18 = vpop.f32.mrb[14].mxu1  ;;  %760 = vmatprep.mubr.bf16.mxu0 %v409_v13 }
 0x1d6   :  { %v386_v19 = vadd.f32 %v735_v18, %v624_v35  ;;  %v377_v20 = vpop.f32.mrb[15].mxu1  ;;  %761 = vmatmul.mubr.bf16.gmra.mrb[24].mxu0 %v410_v12  ;;  %v403_v22 = vmax.f32 %v383_v15, 0.0 }
 0x1d7   :  { %v378_v21 = vadd.f32 %v624_v35, %v377_v20  ;;  %v401_v24 = vmax.f32 %v375_v17, 0.0 }
 0x1d8   :  { %v404_v23 = vmax.f32 %v386_v19, 0.0 }
 0x1d9   :  { %v402_v25 = vmax.f32 %v378_v21, 0.0 }
 0x1da   :  { %v412_v26 = vpack.c.bf16 %v404_v23, %v403_v22 }
 0x1db   :  { %v411_v27 = vpack.c.bf16 %v402_v25, %v401_v24 }
 0x1dd   :  { %764 = vmatprep.mubr.bf16.mxu0 %v411_v27 }
 0x1de   :  { %765 = vmatmul.mubr.bf16.gmra.mrb[28].mxu0 %v412_v26 }
 0x299   :  { %v754_v29 = vpop.f32.mrb[16].mxu0 }
 0x29a   :  { %v527_v30 = vadd.f32 %v754_v29, %v633_v28  ;;  %v518_v31 = vpop.f32.mrb[17].mxu0 }
 0x29b   :  { %v519_v32 = vadd.f32 %v633_v28, %v518_v31  ;;  %v755_v33 = vpop.f32.mrb[18].mxu0 }
 0x29c   :  { %583 = vst [vmem:[#allocation2 + $0x10] sm:$0xff] %v527_v30  ;;  %v530_v34 = vadd.f32 %v755_v33, %v633_v28  ;;  %v521_v35 = vpop.f32.mrb[19].mxu0 }
 0x29d   :  { %581 = vst [vmem:[#allocation2] sm:$0xff] %v519_v32  ;;  %v522_v36 = vadd.f32 %v633_v28, %v521_v35 }
 0x29e   :  { %584 = vst [vmem:[#allocation2 + $0x18] sm:$0xff] %v530_v34 }
 0x29f   :  { %582 = vst [vmem:[#allocation2 + $0x8] sm:$0xff] %v522_v36 }
 0x2a1   :  { %v758_v37 = vpop.f32.mrb[20].mxu0 }
 0x2a2   :  { %v543_v38 = vadd.f32 %v758_v37, %v633_v28  ;;  %v534_v39 = vpop.f32.mrb[21].mxu0 }
 0x2a3   :  { %v535_v40 = vadd.f32 %v633_v28, %v534_v39  ;;  %v759_v41 = vpop.f32.mrb[22].mxu0 }
 0x2a4   :  { %587 = vst [vmem:[#allocation2 + $0x30] sm:$0xff] %v543_v38  ;;  %v546_v42 = vadd.f32 %v759_v41, %v633_v28  ;;  %v537_v43 = vpop.f32.mrb[23].mxu0 }
 0x2a5   :  { %585 = vst [vmem:[#allocation2 + $0x20] sm:$0xff] %v535_v40  ;;  %v538_v44 = vadd.f32 %v633_v28, %v537_v43 }
 0x2a6   :  { %588 = vst [vmem:[#allocation2 + $0x38] sm:$0xff] %v546_v42 }
 0x2a7   :  { %586 = vst [vmem:[#allocation2 + $0x28] sm:$0xff] %v538_v44 }
 0x2a9   :  { %v762_v45 = vpop.f32.mrb[24].mxu0 }
 0x2aa   :  { %v559_v46 = vadd.f32 %v762_v45, %v633_v28  ;;  %v550_v47 = vpop.f32.mrb[25].mxu0 }
 0x2ab   :  { %v551_v48 = vadd.f32 %v633_v28, %v550_v47  ;;  %v763_v49 = vpop.f32.mrb[26].mxu0 }
 0x2ac   :  { %591 = vst [vmem:[#allocation2 + $0x50] sm:$0xff] %v559_v46  ;;  %v562_v50 = vadd.f32 %v763_v49, %v633_v28  ;;  %v553_v51 = vpop.f32.mrb[27].mxu0 }
 0x2ad   :  { %589 = vst [vmem:[#allocation2 + $0x40] sm:$0xff] %v551_v48  ;;  %v554_v52 = vadd.f32 %v633_v28, %v553_v51 }
 0x2ae   :  { %592 = vst [vmem:[#allocation2 + $0x58] sm:$0xff] %v562_v50 }
 0x2af   :  { %590 = vst [vmem:[#allocation2 + $0x48] sm:$0xff] %v554_v52 }
 0x2b1   :  { %v766_v53 = vpop.f32.mrb[28].mxu0 }
 0x2b2   :  { %v575_v54 = vadd.f32 %v766_v53, %v633_v28  ;;  %v566_v55 = vpop.f32.mrb[29].mxu0 }
 0x2b3   :  { %v567_v56 = vadd.f32 %v633_v28, %v566_v55  ;;  %v767_v57 = vpop.f32.mrb[30].mxu0 }
 0x2b4   :  { %595 = vst [vmem:[#allocation2 + $0x70] sm:$0xff] %v575_v54  ;;  %v578_v58 = vadd.f32 %v767_v57, %v633_v28  ;;  %v569_v59 = vpop.f32.mrb[31].mxu0 }
 0x2b5   :  { %593 = vst [vmem:[#allocation2 + $0x60] sm:$0xff] %v567_v56  ;;  %v570_v60 = vadd.f32 %v633_v28, %v569_v59 }
 0x2b6   :  { %596 = vst [vmem:[#allocation2 + $0x78] sm:$0xff] %v578_v58 }
 0x2b7   :  { %594 = vst [vmem:[#allocation2 + $0x68] sm:$0xff] %v570_v60 }
 0x2b8   :  { %800 = shalt.err (!%p797_p4)
}
 0x2b9   :  { %s801_s25 = scalar_lea.hbm %s994_s7, 2048 }
 0x2ba   :  { %p802_p5 = scmp.ne.s32.totalorder %s994_s7, %s801_s25  ;;  %p805_p6 = scmp.lt.u32.totalorder %s801_s25, %s994_s7 }
 0x2bc   :  { %p807_p7 = pnand %p805_p6, %p802_p5 }
 0x2be   :  { %810 = shalt.err (!%p807_p7)
}
 0x2bf   :  { %s814_s29 = smov 128   ;;  %s815_s30 = smov 8  }
 0x2c0   :  { %608 = dma.vmem_to_hbm [thread:$0]  %s603_s21, 2048, %s994_s7, [#allocation3], %s814_s29, %s814_s29, %s815_s30  }
 0x2c1   :  { %811 = dma.done.wait [#allocation3], 2048  }
 0x2c2   :  { %812 = vsyncadd [#allocation3], 4294965248 }
 0x2c3   :  { %612 = vsyncpa [#allocation3], 1 }

</bundles_post_ra>
